<compile_context>
chip_gen: v7x
topology: tpu7x:2x2x1
jax: 0.10.0
libtpu: 0.0.40
codegen_flags: <defaults>
</compile_context>

<pallas_src>
import functools

import jax
import jax.numpy as jnp
import numpy as np
from jax.experimental import pallas as pl
from jax.experimental.pallas import tpu as pltpu


def _round_up(x, m):
    return (x + m - 1) // m * m


# --------------------------------------------------------------------------- #
# Grid-invariant time conditioning (hoisted out of the kernel; tiny JAX op).
# --------------------------------------------------------------------------- #
def _time_cond(t, p):
    hidden = p["wt1"].shape[0]
    half = hidden // 2
    idx = jnp.arange(half, dtype=jnp.float32)
    freqs = jnp.exp(-jnp.log(10000.0) * idx / half)
    ang = t[0] * freqs
    temb = jnp.concatenate([jnp.sin(ang), jnp.cos(ang)])[None, :]      # (1, H)
    h_t = temb @ p["wt1"] + p["bt1"]
    h_t = h_t * jax.nn.sigmoid(h_t)                                    # SiLU
    return h_t @ p["wt2"] + p["bt2"]                                   # (1, H)


# --------------------------------------------------------------------------- #
# Row-tile selection: multiple of 16, VMEM-budgeted, minimal padding, and >= 2
# grid steps when rows allow (so v7x's 2 TensorCores both get work; v5e/v6e pay
# only ~0.35 us for the extra step).
# --------------------------------------------------------------------------- #
def _choose_row_tile(rows, feat, hidden, ff_dim, feat_p, act_budget=24 << 20):
    per_row = (2 * 3 * feat * 2                      # double-buffered bf16 inputs
               + 2 * feat_p * 2                      # double-buffered bf16 output
               + 2 * (2 * hidden + ff_dim + feat_p) * 4)  # f32 temporaries (2 branches)
    max_tr = max(16, min(1024, (act_budget // per_row) // 16 * 16))
    rows16 = _round_up(rows, 16)
    best = None
    for tr in range(16, min(max_tr, rows16) + 1, 16):
        rows_p = _round_up(rows, tr)
        steps = rows_p // tr
        if steps < 2 and rows16 >= 32:
            continue                                  # keep >= 2 steps for v7x megacore
        cost = rows_p + 16 * steps                    # padded work + per-step overhead
        if best is None or cost < best[0] or (cost == best[0] and tr > best[1]):
            best = (cost, tr, rows_p)
    if best is None:
        tr = min(max_tr, rows16)
        return tr, _round_up(rows, tr)
    return best[1], best[2]


# --------------------------------------------------------------------------- #
# Pallas kernel: one grid step per row tile. The uncond CFG branch reuses the
# cond branch's input-projection partial products (text term dropped, speech
# term gated by the grid-invariant scalar keep_sc in {0, 1}).
# --------------------------------------------------------------------------- #
def fm_cfg_kernel(keep_ref, gs_ref,                 # SMEM scalars, shape (1,)
                  x_ref, tc_ref, sc_ref,            # (TR, F) bf16 row tiles
                  wx_ref, wtc_ref, wsc_ref, bh_ref,  # input proj (F,H) bf16, (1,H) f32
                  w1_ref, b1_ref, w2_ref, b2_ref,   # feed-forward block
                  wout_ref, bout_ref,               # output projection (H,Fp), (1,Fp)
                  v_ref):                           # output (TR, Fp) bf16
    f32 = jnp.float32
    bf16 = jnp.bfloat16

    # Shared input-projection partial products (both CFG branches reuse them).
    xw = jnp.dot(x_ref[...], wx_ref[...], preferred_element_type=f32)
    tcw = jnp.dot(tc_ref[...], wtc_ref[...], preferred_element_type=f32)
    scw = jnp.dot(sc_ref[...], wsc_ref[...], preferred_element_type=f32)
    bh = bh_ref[...]                                 # bias with t-conditioning pre-folded

    h_cond = xw + tcw + scw + bh
    h_uncond = xw + keep_ref[0] * scw + bh           # text=0; speech gated by keep in {0,1}

    def tail(h):
        ff = jnp.dot(h.astype(bf16), w1_ref[...],
                     preferred_element_type=f32) + b1_ref[...]
        ff = ff * jax.nn.sigmoid(ff)                 # SiLU (EUP), f32
        h = h + jnp.dot(ff.astype(bf16), w2_ref[...],
                        preferred_element_type=f32) + b2_ref[...]
        return jnp.dot(h.astype(bf16), wout_ref[...],
                       preferred_element_type=f32) + bout_ref[...]

    out_cond = tail(h_cond)
    out_uncond = tail(h_uncond)

    gs = gs_ref[0]                                   # pre-gated guidance scale
    v_ref[...] = ((1.0 + gs) * out_cond - gs * out_uncond).astype(v_ref.dtype)


# --------------------------------------------------------------------------- #
# Wrapper
# --------------------------------------------------------------------------- #
@jax.jit
def onnx_flow_matching_forward(t, x, text_condition, speech_condition,
                               guidance_scale, params):
    B, T, F = x.shape
    H = params["w1"].shape[0]
    FF = params["w1"].shape[1]

    rows = B * T
    Fp = _round_up(F, 128)                           # lane-dense output width
    TR, rows_p = _choose_row_tile(rows, F, H, FF, Fp)

    # Grid-invariant CFG gates + time conditioning, hoisted out of the kernel.
    keep_sc = jnp.where(t > 0.5, 0.0, 1.0).astype(jnp.float32)                 # (1,)
    gs_eff = jnp.where(t > 0.5, guidance_scale,
                       guidance_scale * 2.0).astype(jnp.float32)               # (1,)
    bias_h = (params["bin"] + _time_cond(t, params)).astype(jnp.float32)       # (1, H)

    def rows_pad(a):
        a = a.reshape(rows, F)
        if rows_p != rows:
            a = jnp.pad(a, ((0, rows_p - rows), (0, 0)))
        return a.astype(jnp.bfloat16)

    xr = rows_pad(x)
    tcr = rows_pad(text_condition)
    scr = rows_pad(speech_condition)

    bf = jnp.bfloat16
    wx = params["wx"].astype(bf)
    wtc = params["wtc"].astype(bf)
    wsc = params["wsc"].astype(bf)
    w1 = params["w1"].astype(bf)
    w2 = params["w2"].astype(bf)
    wout = jnp.pad(params["wout"], ((0, 0), (0, Fp - F))).astype(bf)
    bout = jnp.pad(params["bout"], ((0, 0), (0, Fp - F))).astype(jnp.float32)
    b1 = params["b1"].astype(jnp.float32)
    b2 = params["b2"].astype(jnp.float32)

    const2 = lambda shape: pl.BlockSpec(shape, lambda r: (0, 0))
    smem = lambda: pl.BlockSpec(memory_space=pltpu.MemorySpace.SMEM)
    row_blk = lambda last: pl.BlockSpec((TR, last), lambda r: (r, 0))

    in_specs = [
        smem(), smem(),                               # keep_sc, gs_eff
        row_blk(F), row_blk(F), row_blk(F),           # x, text, speech row tiles
        const2((F, H)), const2((F, H)), const2((F, H)), const2((1, H)),
        const2((H, FF)), const2((1, FF)),             # ff up
        const2((FF, H)), const2((1, H)),              # ff down
        const2((H, Fp)), const2((1, Fp)),             # output proj
    ]
    out_spec = pl.BlockSpec((TR, Fp), lambda r: (r, 0))

    # Explicit VMEM budget (constant-index weights + double-buffered row tiles
    # + f32 temporaries) and an advisory cost estimate for XLA's scheduler.
    w_bytes = (3 * F * H + H * FF + FF * H + H * Fp) * 2 + (2 * H + FF + Fp) * 4
    act_bytes = TR * (2 * 3 * F * 2 + 2 * Fp * 2 + 2 * (2 * H + FF + Fp) * 4)
    vmem_limit = int(min(56 << 20, max(16 << 20, 2 * w_bytes + act_bytes + (4 << 20))))

    flops = 6 * rows_p * F * H + 4 * rows_p * (H * FF + FF * H + H * Fp)
    transcendentals = 2 * rows_p * FF
    bytes_accessed = rows_p * (3 * F + Fp) * 2 + w_bytes

    v_p = pl.pallas_call(
        fm_cfg_kernel,
        out_shape=jax.ShapeDtypeStruct((rows_p, Fp), jnp.bfloat16),
        grid_spec=pltpu.PrefetchScalarGridSpec(
            num_scalar_prefetch=0,
            grid=(rows_p // TR,),
            in_specs=in_specs,
            out_specs=out_spec,
        ),
        compiler_params=pltpu.CompilerParams(
            dimension_semantics=("parallel",),
            vmem_limit_bytes=vmem_limit,
        ),
        cost_estimate=pl.CostEstimate(
            flops=flops,
            transcendentals=transcendentals,
            bytes_accessed=bytes_accessed,
        ),
    )(keep_sc, gs_eff, xr, tcr, scr, wx, wtc, wsc, bias_h,
      w1, b1, w2, b2, wout, bout)

    return v_p[:rows, :F].astype(jnp.float32).reshape(B, T, F)


# --------------------------------------------------------------------------- #
# Pure-JAX reference (mirrors the PyTorch wrapper exactly: repeat/cat/chunk;
# synthetic decoder uses the same bf16-operand / f32-accumulation policy).
# --------------------------------------------------------------------------- #
def reference_forward(t, x, tc, sc, gs, p):
    bf = jnp.bfloat16

    def fm_decoder(t_, xt, text_c, speech_c):
        t_cond = _time_cond(t_, p)[:, None, :]                         # (1, 1, H)
        h = (jnp.dot(xt.astype(bf), p["wx"].astype(bf),
                     preferred_element_type=jnp.float32)
             + jnp.dot(text_c.astype(bf), p["wtc"].astype(bf),
                       preferred_element_type=jnp.float32)
             + jnp.dot(speech_c.astype(bf), p["wsc"].astype(bf),
                       preferred_element_type=jnp.float32)
             + p["bin"] + t_cond)
        ff = jnp.dot(h.astype(bf), p["w1"].astype(bf),
                     preferred_element_type=jnp.float32) + p["b1"]
        ff = ff * jax.nn.sigmoid(ff)
        h = h + jnp.dot(ff.astype(bf), p["w2"].astype(bf),
                        preferred_element_type=jnp.float32) + p["b2"]
        return jnp.dot(h.astype(bf), p["wout"].astype(bf),
                       preferred_element_type=jnp.float32) + p["bout"]

    x2 = jnp.concatenate([x, x], axis=0)
    tc2 = jnp.concatenate([jnp.zeros_like(tc), tc], axis=0)
    sc_u = jnp.where(t > 0.5, jnp.zeros_like(sc), sc)
    sc2 = jnp.concatenate([sc_u, sc], axis=0)
    gs_eff = jnp.where(t > 0.5, gs, gs * 2.0)
    data = fm_decoder(t, x2, tc2, sc2)
    data_uncond, data_cond = jnp.split(data, 2, axis=0)
    return (1.0 + gs_eff) * data_cond - gs_eff * data_uncond


# --------------------------------------------------------------------------- #
# Deterministic parameter init
# --------------------------------------------------------------------------- #
def init_params(key, feat_dim, hidden, ff_dim):
    ks = jax.random.split(key, 16)

    def w(k, shape):
        fan_in = shape[0]
        return jax.random.normal(k, shape, jnp.float32) / jnp.sqrt(fan_in)

    def b(k, shape):
        return jax.random.normal(k, shape, jnp.float32) * 0.1

    return {
        "wt1": w(ks[0], (hidden, hidden)), "bt1": b(ks[1], (1, hidden)),
        "wt2": w(ks[2], (hidden, hidden)), "bt2": b(ks[3], (1, hidden)),
        "wx": w(ks[4], (feat_dim, hidden)),
        "wtc": w(ks[5], (feat_dim, hidden)),
        "wsc": w(ks[6], (feat_dim, hidden)),
        "bin": b(ks[7], (1, hidden)),
        "w1": w(ks[8], (hidden, ff_dim)), "b1": b(ks[9], (1, ff_dim)),
        "w2": w(ks[10], (ff_dim, hidden)), "b2": b(ks[11], (1, hidden)),
        "wout": w(ks[12], (hidden, feat_dim)), "bout": b(ks[13], (1, feat_dim)),
    }


if __name__ == "__main__":
    B, T, F, H, FF = 2, 16, 8, 128, 256

    key = jax.random.PRNGKey(0)
    k_x, k_tc, k_sc, k_p = jax.random.split(key, 4)
    x = jax.random.normal(k_x, (B, T, F), jnp.float32)
    text_condition = jax.random.normal(k_tc, (B, T, F), jnp.float32)
    speech_condition = jax.random.normal(k_sc, (B, T, F), jnp.float32)
    guidance_scale = jnp.array([1.5], jnp.float32)
    params = init_params(k_p, F, H, FF)

    for t_val in (0.3, 0.7):   # exercise both CFG gates (t <= 0.5 and t > 0.5)
        t = jnp.array([t_val], jnp.float32)
        v = onnx_flow_matching_forward(t, x, text_condition, speech_condition,
                                       guidance_scale, params)
        v = jax.block_until_ready(v)
        v_ref = reference_forward(t, x, text_condition, speech_condition,
                                  guidance_scale, params)
        assert v.shape == (B, T, F)
        assert bool(jnp.all(jnp.isfinite(v)))
        np.testing.assert_allclose(np.asarray(v), np.asarray(v_ref),
                                   rtol=1e-2, atol=1e-2)

    print("KERNEL_OK")
</pallas_src>

<mosaic_0001>
module attributes {stable_mosaic.version = 11 : i64} {
  func.func @fm_cfg_kernel(%arg0: i32, %arg1: memref<1xf32, #tpu.memory_space<smem>>, %arg2: memref<1xf32, #tpu.memory_space<smem>>, %arg3: memref<16x8xbf16, #tpu.memory_space<vmem>>, %arg4: memref<16x8xbf16, #tpu.memory_space<vmem>>, %arg5: memref<16x8xbf16, #tpu.memory_space<vmem>>, %arg6: memref<8x128xbf16, #tpu.memory_space<vmem>>, %arg7: memref<8x128xbf16, #tpu.memory_space<vmem>>, %arg8: memref<8x128xbf16, #tpu.memory_space<vmem>>, %arg9: memref<1x128xf32, #tpu.memory_space<vmem>>, %arg10: memref<128x256xbf16, #tpu.memory_space<vmem>>, %arg11: memref<1x256xf32, #tpu.memory_space<vmem>>, %arg12: memref<256x128xbf16, #tpu.memory_space<vmem>>, %arg13: memref<1x128xf32, #tpu.memory_space<vmem>>, %arg14: memref<128x128xbf16, #tpu.memory_space<vmem>>, %arg15: memref<1x128xf32, #tpu.memory_space<vmem>>, %arg16: memref<16x128xbf16, #tpu.memory_space<vmem>>) attributes {dimension_semantics = [#tpu.dimension_semantics<parallel>], iteration_bounds = array<i64: 2>, scalar_prefetch = 0 : i64, scratch_operands = 0 : i64, tpu.core_type = #tpu.core_type<tc>, window_params = [{transform_indices = @transform_0, window_bounds = array<i64: 1>}, {transform_indices = @transform_1, window_bounds = array<i64: 1>}, {transform_indices = @transform_2, window_bounds = array<i64: 16, 8>}, {transform_indices = @transform_3, window_bounds = array<i64: 16, 8>}, {transform_indices = @transform_4, window_bounds = array<i64: 16, 8>}, {pipeline_mode = #tpu.pipeline_mode<synchronous>, transform_indices = @transform_5, window_bounds = array<i64: 8, 128>}, {pipeline_mode = #tpu.pipeline_mode<synchronous>, transform_indices = @transform_6, window_bounds = array<i64: 8, 128>}, {pipeline_mode = #tpu.pipeline_mode<synchronous>, transform_indices = @transform_7, window_bounds = array<i64: 8, 128>}, {pipeline_mode = #tpu.pipeline_mode<synchronous>, transform_indices = @transform_8, window_bounds = array<i64: 1, 128>}, {pipeline_mode = #tpu.pipeline_mode<synchronous>, transform_indices = @transform_9, window_bounds = array<i64: 128, 256>}, {pipeline_mode = #tpu.pipeline_mode<synchronous>, transform_indices = @transform_10, window_bounds = array<i64: 1, 256>}, {pipeline_mode = #tpu.pipeline_mode<synchronous>, transform_indices = @transform_11, window_bounds = array<i64: 256, 128>}, {pipeline_mode = #tpu.pipeline_mode<synchronous>, transform_indices = @transform_12, window_bounds = array<i64: 1, 128>}, {pipeline_mode = #tpu.pipeline_mode<synchronous>, transform_indices = @transform_13, window_bounds = array<i64: 128, 128>}, {pipeline_mode = #tpu.pipeline_mode<synchronous>, transform_indices = @transform_14, window_bounds = array<i64: 1, 128>}, {transform_indices = @transform_15, window_bounds = array<i64: 16, 128>}]} {
    %c0 = arith.constant 0 : index
    %c0_0 = arith.constant 0 : index
    %0 = vector.load %arg3[%c0, %c0_0] : memref<16x8xbf16, #tpu.memory_space<vmem>>, vector<16x8xbf16>
    %c0_1 = arith.constant 0 : index
    %c0_2 = arith.constant 0 : index
    %1 = vector.load %arg6[%c0_1, %c0_2] : memref<8x128xbf16, #tpu.memory_space<vmem>>, vector<8x128xbf16>
    %cst = arith.constant dense<0.000000e+00> : vector<16x128xf32>
    %2 = tpu.matmul %0, %1, %cst {dimension_numbers = #tpu.dot_dimension_numbers<[1], [0], [0], [1], [0, 0, 1, 1], [], []>} : vector<16x8xbf16>, vector<8x128xbf16>, vector<16x128xf32> -> vector<16x128xf32>
    %c0_3 = arith.constant 0 : index
    %c0_4 = arith.constant 0 : index
    %3 = vector.load %arg4[%c0_3, %c0_4] : memref<16x8xbf16, #tpu.memory_space<vmem>>, vector<16x8xbf16>
    %c0_5 = arith.constant 0 : index
    %c0_6 = arith.constant 0 : index
    %4 = vector.load %arg7[%c0_5, %c0_6] : memref<8x128xbf16, #tpu.memory_space<vmem>>, vector<8x128xbf16>
    %cst_7 = arith.constant dense<0.000000e+00> : vector<16x128xf32>
    %5 = tpu.matmul %3, %4, %cst_7 {dimension_numbers = #tpu.dot_dimension_numbers<[1], [0], [0], [1], [0, 0, 1, 1], [], []>} : vector<16x8xbf16>, vector<8x128xbf16>, vector<16x128xf32> -> vector<16x128xf32>
    %c0_8 = arith.constant 0 : index
    %c0_9 = arith.constant 0 : index
    %6 = vector.load %arg5[%c0_8, %c0_9] : memref<16x8xbf16, #tpu.memory_space<vmem>>, vector<16x8xbf16>
    %c0_10 = arith.constant 0 : index
    %c0_11 = arith.constant 0 : index
    %7 = vector.load %arg8[%c0_10, %c0_11] : memref<8x128xbf16, #tpu.memory_space<vmem>>, vector<8x128xbf16>
    %cst_12 = arith.constant dense<0.000000e+00> : vector<16x128xf32>
    %8 = tpu.matmul %6, %7, %cst_12 {dimension_numbers = #tpu.dot_dimension_numbers<[1], [0], [0], [1], [0, 0, 1, 1], [], []>} : vector<16x8xbf16>, vector<8x128xbf16>, vector<16x128xf32> -> vector<16x128xf32>
    %c0_13 = arith.constant 0 : index
    %c0_14 = arith.constant 0 : index
    %9 = vector.load %arg9[%c0_13, %c0_14] : memref<1x128xf32, #tpu.memory_space<vmem>>, vector<1x128xf32>
    %10 = arith.addf %2, %5 : vector<16x128xf32>
    %11 = arith.addf %10, %8 : vector<16x128xf32>
    %12 = vector.broadcast %9 : vector<1x128xf32> to vector<16x128xf32>
    %13 = arith.addf %11, %12 : vector<16x128xf32>
    %c0_15 = arith.constant 0 : index
    %14 = memref.load %arg1[%c0_15] : memref<1xf32, #tpu.memory_space<smem>>
    %15 = vector.broadcast %14 : f32 to vector<16x128xf32>
    %16 = arith.mulf %15, %8 : vector<16x128xf32>
    %17 = arith.addf %2, %16 : vector<16x128xf32>
    %18 = vector.broadcast %9 : vector<1x128xf32> to vector<16x128xf32>
    %19 = arith.addf %17, %18 : vector<16x128xf32>
    %20 = arith.truncf %13 : vector<16x128xf32> to vector<16x128xbf16>
    %c0_16 = arith.constant 0 : index
    %c0_17 = arith.constant 0 : index
    %21 = vector.load %arg10[%c0_16, %c0_17] : memref<128x256xbf16, #tpu.memory_space<vmem>>, vector<128x256xbf16>
    %cst_18 = arith.constant dense<0.000000e+00> : vector<16x256xf32>
    %22 = tpu.matmul %20, %21, %cst_18 {dimension_numbers = #tpu.dot_dimension_numbers<[1], [0], [0], [1], [0, 0, 1, 1], [], []>} : vector<16x128xbf16>, vector<128x256xbf16>, vector<16x256xf32> -> vector<16x256xf32>
    %c0_19 = arith.constant 0 : index
    %c0_20 = arith.constant 0 : index
    %23 = vector.load %arg11[%c0_19, %c0_20] : memref<1x256xf32, #tpu.memory_space<vmem>>, vector<1x256xf32>
    %24 = vector.broadcast %23 : vector<1x256xf32> to vector<16x256xf32>
    %25 = arith.addf %22, %24 : vector<16x256xf32>
    %26 = arith.negf %25 : vector<16x256xf32>
    %27 = math.exp %26 : vector<16x256xf32>
    %cst_21 = arith.constant 1.000000e+00 : f32
    %28 = vector.broadcast %cst_21 : f32 to vector<16x256xf32>
    %29 = arith.addf %28, %27 : vector<16x256xf32>
    %30 = arith.divf %28, %29 : vector<16x256xf32>
    %31 = arith.mulf %25, %30 : vector<16x256xf32>
    %32 = arith.truncf %31 : vector<16x256xf32> to vector<16x256xbf16>
    %c0_22 = arith.constant 0 : index
    %c0_23 = arith.constant 0 : index
    %33 = vector.load %arg12[%c0_22, %c0_23] : memref<256x128xbf16, #tpu.memory_space<vmem>>, vector<256x128xbf16>
    %cst_24 = arith.constant dense<0.000000e+00> : vector<16x128xf32>
    %34 = tpu.matmul %32, %33, %cst_24 {dimension_numbers = #tpu.dot_dimension_numbers<[1], [0], [0], [1], [0, 0, 1, 1], [], []>} : vector<16x256xbf16>, vector<256x128xbf16>, vector<16x128xf32> -> vector<16x128xf32>
    %35 = arith.addf %13, %34 : vector<16x128xf32>
    %c0_25 = arith.constant 0 : index
    %c0_26 = arith.constant 0 : index
    %36 = vector.load %arg13[%c0_25, %c0_26] : memref<1x128xf32, #tpu.memory_space<vmem>>, vector<1x128xf32>
    %37 = vector.broadcast %36 : vector<1x128xf32> to vector<16x128xf32>
    %38 = arith.addf %35, %37 : vector<16x128xf32>
    %39 = arith.truncf %38 : vector<16x128xf32> to vector<16x128xbf16>
    %c0_27 = arith.constant 0 : index
    %c0_28 = arith.constant 0 : index
    %40 = vector.load %arg14[%c0_27, %c0_28] : memref<128x128xbf16, #tpu.memory_space<vmem>>, vector<128x128xbf16>
    %cst_29 = arith.constant dense<0.000000e+00> : vector<16x128xf32>
    %41 = tpu.matmul %39, %40, %cst_29 {dimension_numbers = #tpu.dot_dimension_numbers<[1], [0], [0], [1], [0, 0, 1, 1], [], []>} : vector<16x128xbf16>, vector<128x128xbf16>, vector<16x128xf32> -> vector<16x128xf32>
    %c0_30 = arith.constant 0 : index
    %c0_31 = arith.constant 0 : index
    %42 = vector.load %arg15[%c0_30, %c0_31] : memref<1x128xf32, #tpu.memory_space<vmem>>, vector<1x128xf32>
    %43 = vector.broadcast %42 : vector<1x128xf32> to vector<16x128xf32>
    %44 = arith.addf %41, %43 : vector<16x128xf32>
    %45 = arith.truncf %19 : vector<16x128xf32> to vector<16x128xbf16>
    %c0_32 = arith.constant 0 : index
    %c0_33 = arith.constant 0 : index
    %46 = vector.load %arg10[%c0_32, %c0_33] : memref<128x256xbf16, #tpu.memory_space<vmem>>, vector<128x256xbf16>
    %cst_34 = arith.constant dense<0.000000e+00> : vector<16x256xf32>
    %47 = tpu.matmul %45, %46, %cst_34 {dimension_numbers = #tpu.dot_dimension_numbers<[1], [0], [0], [1], [0, 0, 1, 1], [], []>} : vector<16x128xbf16>, vector<128x256xbf16>, vector<16x256xf32> -> vector<16x256xf32>
    %c0_35 = arith.constant 0 : index
    %c0_36 = arith.constant 0 : index
    %48 = vector.load %arg11[%c0_35, %c0_36] : memref<1x256xf32, #tpu.memory_space<vmem>>, vector<1x256xf32>
    %49 = vector.broadcast %48 : vector<1x256xf32> to vector<16x256xf32>
    %50 = arith.addf %47, %49 : vector<16x256xf32>
    %51 = arith.negf %50 : vector<16x256xf32>
    %52 = math.exp %51 : vector<16x256xf32>
    %cst_37 = arith.constant 1.000000e+00 : f32
    %53 = vector.broadcast %cst_37 : f32 to vector<16x256xf32>
    %54 = arith.addf %53, %52 : vector<16x256xf32>
    %55 = arith.divf %53, %54 : vector<16x256xf32>
    %56 = arith.mulf %50, %55 : vector<16x256xf32>
    %57 = arith.truncf %56 : vector<16x256xf32> to vector<16x256xbf16>
    %c0_38 = arith.constant 0 : index
    %c0_39 = arith.constant 0 : index
    %58 = vector.load %arg12[%c0_38, %c0_39] : memref<256x128xbf16, #tpu.memory_space<vmem>>, vector<256x128xbf16>
    %cst_40 = arith.constant dense<0.000000e+00> : vector<16x128xf32>
    %59 = tpu.matmul %57, %58, %cst_40 {dimension_numbers = #tpu.dot_dimension_numbers<[1], [0], [0], [1], [0, 0, 1, 1], [], []>} : vector<16x256xbf16>, vector<256x128xbf16>, vector<16x128xf32> -> vector<16x128xf32>
    %60 = arith.addf %19, %59 : vector<16x128xf32>
    %c0_41 = arith.constant 0 : index
    %c0_42 = arith.constant 0 : index
    %61 = vector.load %arg13[%c0_41, %c0_42] : memref<1x128xf32, #tpu.memory_space<vmem>>, vector<1x128xf32>
    %62 = vector.broadcast %61 : vector<1x128xf32> to vector<16x128xf32>
    %63 = arith.addf %60, %62 : vector<16x128xf32>
    %64 = arith.truncf %63 : vector<16x128xf32> to vector<16x128xbf16>
    %c0_43 = arith.constant 0 : index
    %c0_44 = arith.constant 0 : index
    %65 = vector.load %arg14[%c0_43, %c0_44] : memref<128x128xbf16, #tpu.memory_space<vmem>>, vector<128x128xbf16>
    %cst_45 = arith.constant dense<0.000000e+00> : vector<16x128xf32>
    %66 = tpu.matmul %64, %65, %cst_45 {dimension_numbers = #tpu.dot_dimension_numbers<[1], [0], [0], [1], [0, 0, 1, 1], [], []>} : vector<16x128xbf16>, vector<128x128xbf16>, vector<16x128xf32> -> vector<16x128xf32>
    %c0_46 = arith.constant 0 : index
    %c0_47 = arith.constant 0 : index
    %67 = vector.load %arg15[%c0_46, %c0_47] : memref<1x128xf32, #tpu.memory_space<vmem>>, vector<1x128xf32>
    %68 = vector.broadcast %67 : vector<1x128xf32> to vector<16x128xf32>
    %69 = arith.addf %66, %68 : vector<16x128xf32>
    %c0_48 = arith.constant 0 : index
    %70 = memref.load %arg2[%c0_48] : memref<1xf32, #tpu.memory_space<smem>>
    %cst_49 = arith.constant 1.000000e+00 : f32
    %71 = arith.addf %cst_49, %70 : f32
    %72 = vector.broadcast %71 : f32 to vector<16x128xf32>
    %73 = arith.mulf %72, %44 : vector<16x128xf32>
    %74 = vector.broadcast %70 : f32 to vector<16x128xf32>
    %75 = arith.mulf %74, %69 : vector<16x128xf32>
    %76 = arith.subf %73, %75 : vector<16x128xf32>
    %77 = arith.truncf %76 : vector<16x128xf32> to vector<16x128xbf16>
    %c0_50 = arith.constant 0 : index
    %c0_51 = arith.constant 0 : index
    %78 = vector.load %arg16[%c0_50, %c0_51] : memref<16x128xbf16, #tpu.memory_space<vmem>>, vector<16x128xbf16>
    tpu.vector_store %arg16[%c0_50, %c0_51], %77 {strides = array<i32>} : memref<16x128xbf16, #tpu.memory_space<vmem>>, vector<16x128xbf16>,
    return
  }
  func.func @transform_0(%arg0: i32) -> i32 {
    %c0_i32 = arith.constant 0 : i32
    %c0_i32_0 = arith.constant 0 : i32
    return %c0_i32 : i32
  }
  func.func @transform_1(%arg0: i32) -> i32 {
    %c0_i32 = arith.constant 0 : i32
    %c0_i32_0 = arith.constant 0 : i32
    return %c0_i32 : i32
  }
  func.func @transform_2(%arg0: i32) -> (i32, i32) {
    %c0_i32 = arith.constant 0 : i32
    %c0_i32_0 = arith.constant 0 : i32
    return %arg0, %c0_i32 : i32, i32
  }
  func.func @transform_3(%arg0: i32) -> (i32, i32) {
    %c0_i32 = arith.constant 0 : i32
    %c0_i32_0 = arith.constant 0 : i32
    return %arg0, %c0_i32 : i32, i32
  }
  func.func @transform_4(%arg0: i32) -> (i32, i32) {
    %c0_i32 = arith.constant 0 : i32
    %c0_i32_0 = arith.constant 0 : i32
    return %arg0, %c0_i32 : i32, i32
  }
  func.func @transform_5(%arg0: i32) -> (i32, i32) {
    %c0_i32 = arith.constant 0 : i32
    %c0_i32_0 = arith.constant 0 : i32
    %c0_i32_1 = arith.constant 0 : i32
    return %c0_i32, %c0_i32_0 : i32, i32
  }
  func.func @transform_6(%arg0: i32) -> (i32, i32) {
    %c0_i32 = arith.constant 0 : i32
    %c0_i32_0 = arith.constant 0 : i32
    %c0_i32_1 = arith.constant 0 : i32
    return %c0_i32, %c0_i32_0 : i32, i32
  }
  func.func @transform_7(%arg0: i32) -> (i32, i32) {
    %c0_i32 = arith.constant 0 : i32
    %c0_i32_0 = arith.constant 0 : i32
    %c0_i32_1 = arith.constant 0 : i32
    return %c0_i32, %c0_i32_0 : i32, i32
  }
  func.func @transform_8(%arg0: i32) -> (i32, i32) {
    %c0_i32 = arith.constant 0 : i32
    %c0_i32_0 = arith.constant 0 : i32
    %c0_i32_1 = arith.constant 0 : i32
    return %c0_i32, %c0_i32_0 : i32, i32
  }
  func.func @transform_9(%arg0: i32) -> (i32, i32) {
    %c0_i32 = arith.constant 0 : i32
    %c0_i32_0 = arith.constant 0 : i32
    %c0_i32_1 = arith.constant 0 : i32
    return %c0_i32, %c0_i32_0 : i32, i32
  }
  func.func @transform_10(%arg0: i32) -> (i32, i32) {
    %c0_i32 = arith.constant 0 : i32
    %c0_i32_0 = arith.constant 0 : i32
    %c0_i32_1 = arith.constant 0 : i32
    return %c0_i32, %c0_i32_0 : i32, i32
  }
  func.func @transform_11(%arg0: i32) -> (i32, i32) {
    %c0_i32 = arith.constant 0 : i32
    %c0_i32_0 = arith.constant 0 : i32
    %c0_i32_1 = arith.constant 0 : i32
    return %c0_i32, %c0_i32_0 : i32, i32
  }
  func.func @transform_12(%arg0: i32) -> (i32, i32) {
    %c0_i32 = arith.constant 0 : i32
    %c0_i32_0 = arith.constant 0 : i32
    %c0_i32_1 = arith.constant 0 : i32
    return %c0_i32, %c0_i32_0 : i32, i32
  }
  func.func @transform_13(%arg0: i32) -> (i32, i32) {
    %c0_i32 = arith.constant 0 : i32
    %c0_i32_0 = arith.constant 0 : i32
    %c0_i32_1 = arith.constant 0 : i32
    return %c0_i32, %c0_i32_0 : i32, i32
  }
  func.func @transform_14(%arg0: i32) -> (i32, i32) {
    %c0_i32 = arith.constant 0 : i32
    %c0_i32_0 = arith.constant 0 : i32
    %c0_i32_1 = arith.constant 0 : i32
    return %c0_i32, %c0_i32_0 : i32, i32
  }
  func.func @transform_15(%arg0: i32) -> (i32, i32) {
    %c0_i32 = arith.constant 0 : i32
    %c0_i32_0 = arith.constant 0 : i32
    return %arg0, %c0_i32 : i32, i32
  }
}

</mosaic_0001>

<bundles_post_ra>
// kernel: onnx_flow_matching_forward.1
= control target key start
LH: loop header
LB: loop body
LE: loop exit
PB: predicated region body
PF: predicated region fallthrough
CT: control target
= control target key end

     0   :  { %s1867_s22 = smov 0   ;;  %s2256_s0 = inlined_call_operand.<no memory space> [shape: f32[1], index: 0, kind: input, shape index: {}]   ;;  %s2257_s1 = inlined_call_operand.<no memory space> [shape: f32[1], index: 1, kind: input, shape index: {}]   ;;  %s2258_s2 = inlined_call_operand.vmem [shape: bf16[32,8], index: 2, kind: input, shape index: {}]   ;;  %s2259_s3 = inlined_call_operand.vmem [shape: bf16[32,8], index: 3, kind: input, shape index: {}]   ;;  %s2260_s4 = inlined_call_operand.vmem [shape: bf16[32,8], index: 4, kind: input, shape index: {}]   ;;  %s2261_s5 = inlined_call_operand.vmem [shape: bf16[8,128], index: 5, kind: input, shape index: {}]   ;;  %s2262_s6 = inlined_call_operand.vmem [shape: bf16[8,128], index: 6, kind: input, shape index: {}]   ;;  %s2263_s7 = inlined_call_operand.vmem [shape: bf16[8,128], index: 7, kind: input, shape index: {}]   ;;  %s2264_s8 = inlined_call_operand.vmem [shape: f32[1,128], index: 8, kind: input, shape index: {}]   ;;  %s2265_s9 = inlined_call_operand.vmem [shape: bf16[128,256], index: 9, kind: input, shape index: {}]   ;;  %s2266_s10 = inlined_call_operand.vmem [shape: f32[1,256], index: 10, kind: input, shape index: {}]   ;;  %s2267_s11 = inlined_call_operand.vmem [shape: bf16[256,128], index: 11, kind: input, shape index: {}]   ;;  %s2268_s12 = inlined_call_operand.vmem [shape: f32[1,128], index: 12, kind: input, shape index: {}]   ;;  %s2269_s13 = inlined_call_operand.vmem [shape: bf16[128,128], index: 13, kind: input, shape index: {}]   ;;  %s2270_s14 = inlined_call_operand.vmem [shape: f32[1,128], index: 14, kind: input, shape index: {}]   ;;  %s2271_s15 = inlined_call_operand.vmem [shape: bf16[32,128], index: 15, kind: output, shape index: {}]  }
   0x1   :  { %20 = sst [smem:[#allocation2]] %s2256_s0 }
   0x2   :  { %21 = sst [smem:[#allocation3]] %s2257_s1 }
   0x3 LB: > { %s1469_s23 = sadd.s32 4294967295, %s1776_s22   ;;  %p1473_p0 = scmp.ge.s32.totalorder %s1776_s22, 1  ;;  %s1776_s22 = sphi %s1867_s22, %s27_s22  }
   0x4   : > { %p462_p1 = scmp.lt.s32.totalorder %s1776_s22, 3 }
   0x6   : > { %p463_p2 = pnand %p1473_p0, %p462_p1 }
   0x7   : > { %v547_v0 = vld [vmem:[%s2261_s5] sm:$0xf] (!%p463_p2)  ;;  %vm557_vm0 = vcmask (!%p463_p2), 1043456   ;;  %v2272_v2 = vmov (!%p463_p2), 0.0   ;;  %s1474_s26 = sshll.u32 (!%p463_p2), %s1469_s23, 1  ;;  %vm1779_vm1 = vmmov (!%p463_p2), 0  }
   0x8   : > { %466 = sbr.rel (%p463_p2) target bundleno = 1221 (0x4c5), region = 80  ;;  %v604_v1 = vld [vmem:[%s2262_s6] sm:$0xf] (!%p463_p2)  ;;  %1618 = vmatprep.subr.bf16.mxu0 (!%p463_p2), %v2272_v2  ;;  %v559_v3 = vsel (!%p463_p2), %vm557_vm0, %v547_v0, 0  ;;  %1624 = vmatprep.subr.bf16.mxu1 (!%p463_p2), %v2272_v2  ;;  %p521_p3 = scmp.lt.s32.totalorder (!%p463_p2), %s1474_s26, 3  ;;  %vm553_vm2 = vcmask (!%p463_p2), 64512  }
   0x9   : > { %v614_v4 = vsel (!%p463_p2), %vm557_vm0, %v604_v1, 0  ;;  %1619 = vmatpush3.bf16.msra.mxu0 (!%p463_p2), %v559_v3  ;;  %1620 = vmatprep.mubr.msk.bf16.mxu0 (!%p463_p2), %vm1779_vm1, %v2272_v2  ;;  %v1892_v5 = vld [vmem:[%s2265_s9 + $0x4] ss:$8 sps:$4 sm:$0xff] (!%p463_p2)   ;;  %v659_v6 = vld [vmem:[%s2263_s7] sm:$0xf] (!%p463_p2)  ;;  %v2274_v26 = vmov (!%p463_p2), 0  }
   0xa   : > { %1625 = vmatpush3.bf16.msra.mxu1 (!%p463_p2), %v614_v4  ;;  %1626 = vmatprep.mubr.msk.bf16.mxu1 (!%p463_p2), %vm1779_vm1, %v2272_v2  ;;  %v1904_v7 = vld [vmem:[%s2265_s9] ss:$8 sps:$4 sm:$0xff] (!%p463_p2)   ;;  %v1917_v8 = vld [vmem:[%s2265_s9 + $0x14] ss:$8 sps:$4 sm:$0xff] (!%p463_p2)   ;;  %v669_v10 = vsel (!%p463_p2), %vm557_vm0, %v659_v6, 0  ;;  %s725_s25 = sld [smem:[#allocation2]] (!%p463_p2) }
   0xb   : > { %1630 = vmatprep.subr.bf16.mxu0 (!%p463_p2), %v2272_v2  ;;  %842 = vmatprep.subr.bf16.mxu1 (!%p463_p2), %v1892_v5  ;;  %v1928_v12 = vld [vmem:[%s2265_s9 + $0x10] ss:$8 sps:$4 sm:$0xff] (!%p463_p2)   ;;  %v1934_v13 = vld [vmem:[%s2265_s9 + $0x24] ss:$8 sps:$4 sm:$0xff] (!%p463_p2)   ;;  %v1943_v15 = vld [vmem:[%s2265_s9 + $0x20] ss:$8 sps:$4 sm:$0xff] (!%p463_p2)  }
   0xc   : > { %v1948_v16 = vld [vmem:[%s2265_s9 + $0x34] ss:$8 sps:$4 sm:$0xff] (!%p463_p2)   ;;  %v1956_v17 = vld [vmem:[%s2265_s9 + $0x30] ss:$8 sps:$4 sm:$0xff] (!%p463_p2)   ;;  %v1964_v18 = vld [vmem:[%s2265_s9 + $0x44] ss:$8 sps:$4 sm:$0xff] (!%p463_p2)  }
   0xd   : > { %v1969_v19 = vld [vmem:[%s2265_s9 + $0x40] ss:$8 sps:$4 sm:$0xff] (!%p463_p2)   ;;  %v1976_v20 = vld [vmem:[%s2265_s9 + $0x50] ss:$8 sps:$4 sm:$0xff] (!%p463_p2)   ;;  %v1981_v21 = vld [vmem:[%s2265_s9 + $0x54] ss:$8 sps:$4 sm:$0xff] (!%p463_p2)  }
   0xe   : > { %v1988_v22 = vld [vmem:[%s2265_s9 + $0x64] ss:$8 sps:$4 sm:$0xff] (!%p463_p2)   ;;  %v1993_v23 = vld [vmem:[%s2265_s9 + $0x60] ss:$8 sps:$4 sm:$0xff] (!%p463_p2)   ;;  %v2000_v24 = vld [vmem:[%s2265_s9 + $0x74] ss:$8 sps:$4 sm:$0xff] (!%p463_p2)  }
   0xf   : > { %s2278_s26 = smov (!%p521_p3, %s1474_s26), 3  ;;  %v2005_v25 = vld [vmem:[%s2265_s9 + $0x70] ss:$8 sps:$4 sm:$0xff]   ;;  %v1488_v42 = vld [vmem:[%s2264_s8] ss:$0 sm:$0xff]  ;;  %v2041_v56 = vld [vmem:[%s2267_s11 + $0x48] sm:$0xff]  }
  0x10   : > { %s1899_s16 = sshll.u32 %s2278_s26, 2  ;;  %v726_v37 = vstv %s725_s25  ;;  %v2029_v54 = vld [vmem:[%s2267_s11 + $0x40] sm:$0xff]   ;;  %v2046_v57 = vld [vmem:[%s2267_s11 + $0x8] sm:$0xff]   ;;  %v2053_v58 = vld [vmem:[%s2267_s11 + $0x50] sm:$0xff]  }
  0x11   : > { %s524_s21 = scalar_lea.vmem %s2258_s2, %s1899_s16  ;;  %s530_s24 = scalar_lea.vmem %s2259_s3, %s1899_s16  ;;  %v2034_v55 = vld [vmem:[%s2267_s11] sm:$0xff]   ;;  %v2058_v59 = vld [vmem:[%s2267_s11 + $0x10] sm:$0xff]   ;;  %v2065_v60 = vld [vmem:[%s2267_s11 + $0x58] sm:$0xff]  }
  0x12   : > { %v1687_v9 = vld [vmem:[%s524_s21] sm:$0xff]   ;;  %s536_s28 = scalar_lea.vmem %s2260_s4, %s1899_s16  ;;  %v2070_v61 = vld [vmem:[%s2267_s11 + $0x18] sm:$0xff]   ;;  %v2089_v0 = vld [vmem:[%s2267_s11 + $0x68] sm:$0xff]   ;;  %s1369_s21 = sld [smem:[#allocation3]] }
  0x13   : > { %v1688_v11 = vld [vmem:[%s530_s24] sm:$0xff]   ;;  %1621 = vmatmul.mubr.msk.bf16.vlgmr.msra.gmra.mrb[0].mxu0 %vm553_vm2, %v1687_v9  ;;  %v2094_v1 = vld [vmem:[%s2267_s11 + $0x28] sm:$0xff]   ;;  %v2101_v3 = vld [vmem:[%s2267_s11 + $0x70] sm:$0xff]   ;;  %s542_s26 = scalar_lea.vmem %s2271_s15, %s1899_s16 }
  0x14   : > { %1627 = vmatmul.mubr.msk.bf16.vlgmr.msra.gmra.mrb[0].mxu1 %vm553_vm2, %v1688_v11  ;;  %1631 = vmatpush3.bf16.msra.mxu0 %v669_v10  ;;  %v1689_v14 = vld [vmem:[%s536_s28] sm:$0xff]   ;;  %v2106_v4 = vld [vmem:[%s2267_s11 + $0x30] sm:$0xff]   ;;  %v2113_v6 = vld [vmem:[%s2267_s11 + $0x78] sm:$0xff]  }
  0x15   : > { %1632 = vmatprep.mubr.msk.bf16.mxu0 %vm1779_vm1, %v2272_v2  ;;  %843 = vmatpush1.bf16.msra.mxu1 %v1904_v7  ;;  %v2077_v62 = vld [vmem:[%s2267_s11 + $0x60] sm:$0xff]   ;;  %v2118_v9 = vld [vmem:[%s2267_s11 + $0x38] sm:$0xff]   ;;  %v2132_v11 = vld [vmem:[%s2269_s13 + $0x8] sm:$0xff]  }
  0x16   : > { %844 = vmatprep.subr.bf16.mxu1 %v1917_v8  ;;  %874 = vmatprep.mubr.bf16.mxu1 %v2274_v26  ;;  %v2082_v63 = vld [vmem:[%s2267_s11 + $0x20] sm:$0xff]  }
  0x17   : > { %1556 = vmatprep.subr.bf16.mxu0 %v2029_v54  ;;  %v2126_v10 = vld [vmem:[%s2269_s13] sm:$0xff]  }
  0x18   : > { %s1370_s24 = sadd.f32 1.0, %s1369_s21 }
  0x19   : > { %845 = vmatpush1.bf16.msra.mxu1 %v1928_v12 }
  0x1a   : > { %846 = vmatprep.subr.bf16.mxu1 %v1934_v13 }
  0x1b   : > { %1633 = vmatmul.mubr.msk.bf16.vlgmr.msra.gmra.mrb[4].mxu0 %vm553_vm2, %v1689_v14  ;;  %v2146_v14 = vld [vmem:[%s2269_s13 + $0x18] sm:$0xff]  }
  0x1c   : > { %1557 = vmatpush3.bf16.msra.mxu0 %v2034_v55 }
  0x1d   : > { %847 = vmatpush1.bf16.msra.mxu1 %v1943_v15  ;;  %1558 = vmatprep.subr.bf16.mxu0 %v2041_v56 }
  0x1e   : > { %848 = vmatprep.subr.bf16.mxu1 %v1948_v16 }
  0x20   : > { %1559 = vmatpush3.bf16.msra.mxu0 %v2046_v57 }
  0x21   : > { %849 = vmatpush1.bf16.msra.mxu1 %v1956_v17  ;;  %1560 = vmatprep.subr.bf16.mxu0 %v2053_v58 }
  0x22   : > { %850 = vmatprep.subr.bf16.mxu1 %v1964_v18 }
  0x24   : > { %1561 = vmatpush3.bf16.msra.mxu0 %v2058_v59 }
  0x25   : > { %851 = vmatpush1.bf16.msra.mxu1 %v1969_v19  ;;  %1562 = vmatprep.subr.bf16.mxu0 %v2065_v60 }
  0x26   : > { %852 = vmatprep.subr.bf16.mxu1 %v1981_v21 }
  0x28   : > { %1563 = vmatpush3.bf16.msra.mxu0 %v2070_v61 }
  0x29   : > { %853 = vmatpush1.bf16.msra.mxu1 %v1976_v20  ;;  %1564 = vmatprep.subr.bf16.mxu0 %v2077_v62 }
  0x2a   : > { %854 = vmatprep.subr.bf16.mxu1 %v1988_v22 }
  0x2c   : > { %1565 = vmatpush3.bf16.msra.mxu0 %v2082_v63 }
  0x2d   : > { %855 = vmatpush1.bf16.msra.mxu1 %v1993_v23  ;;  %1566 = vmatprep.subr.bf16.mxu0 %v2089_v0 }
  0x2e   : > { %856 = vmatprep.subr.bf16.mxu1 %v2000_v24 }
  0x30   : > { %1567 = vmatpush3.bf16.msra.mxu0 %v2094_v1 }
  0x31   : > { %857 = vmatpush1.bf16.msra.mxu1 %v2005_v25  ;;  %1568 = vmatprep.subr.bf16.mxu0 %v2101_v3 }
  0x32   : > { %1636 = vmatprep.subr.bf16.mxu1 %v2272_v2 }
  0x34   : > { %1569 = vmatpush3.bf16.msra.mxu0 %v2106_v4 }
  0x35   : > { %1570 = vmatprep.subr.bf16.mxu0 %v2113_v6 }
  0x38   : > { %1571 = vmatpush3.bf16.msra.mxu0 %v2118_v9 }
  0x39   : > { %1209 = vmatprep.subr.bf16.mxu0 %v1892_v5  ;;  %v2139_v5 = vld [vmem:[%s2269_s13 + $0x10] sm:$0xff]  }
  0xe6   : > { %v595_v27 = vpop.f32.mrb[0].mxu0 }
  0xe7   : > { %v650_v28 = vpop.f32.mrb[0].mxu1  ;;  %v1622_v29 = vpop.f32.mrb[1].mxu0 }
  0xe8   : > { %v713_v30 = vadd.f32 %v650_v28, %v595_v27  ;;  %v1628_v31 = vpop.f32.mrb[1].mxu1  ;;  %v598_v32 = vpop.f32.mrb[2].mxu0  ;;  %v752_v28 = vlaneseq }
  0xe9   : > { %v653_v33 = vpop.f32.mrb[2].mxu1  ;;  %v1623_v34 = vpop.f32.mrb[3].mxu0  ;;  %v750_v31 = vld [vmem:[%s2266_s10] sm:$0x3] }
  0xea   : > { %v714_v35 = vadd.f32 %v653_v33, %v598_v32  ;;  %v1629_v36 = vpop.f32.mrb[3].mxu1  ;;  %v753_v29 = vshrl.u32 %v752_v28, 7 }
  0xee   : > { %v705_v38 = vpop.f32.mrb[4].mxu0 }
  0xef   : > { %v715_v39 = vadd.f32 %v713_v30, %v705_v38  ;;  %v727_v40 = vmul.f32 %v726_v37, %v705_v38  ;;  %v1634_v41 = vpop.f32.mrb[5].mxu0  ;;  %v754_v30 = vsub.s32 0, %v753_v29 }
  0xf0   : > { %v708_v43 = vpop.f32.mrb[6].mxu0 }
  0xf1   : > { %v729_v44 = vadd.f32 %v727_v40, %v595_v27  ;;  %v716_v45 = vadd.f32 %v714_v35, %v708_v43  ;;  %v728_v46 = vmul.f32 %v726_v37, %v708_v43  ;;  %v1635_v47 = vpop.f32.mrb[7].mxu0  ;;  %v2014_v48 = vadd.f32 %v1488_v42, %v715_v39  ;;  %v2153_v27 = vld [vmem:[%s2269_s13 + $0x20] sm:$0xff]  }
  0xf2   : > { %v2161_v33 = vrot.slane %v750_v31, %v754_v30 }
  0xf3   : > { %v2016_v49 = vadd.f32 %v1488_v42, %v729_v44  ;;  %v2018_v50 = vadd.f32 %v1488_v42, %v716_v45  ;;  %v730_v51 = vadd.f32 %v728_v46, %v598_v32  ;;  %v758_v32 = vsub.s32 1, %v753_v29 }
  0xf5   : > { %v2020_v52 = vadd.f32 %v1488_v42, %v730_v51  ;;  %v733_v53 = vpack.c.bf16 %v2018_v50, %v2014_v48  ;;  %v2163_v34 = vrot.slane %v750_v31, %v758_v32 }
  0xf7   : > { %875 = vmatmul.mubr.bf16.vlgmr.msra.gmra.mrb[4].mxu1 %v733_v53 }
  0xf8   : > { %1652 = vmatprep.mubr.msk.bf16.mxu1 %vm1779_vm1, %v2272_v2  ;;  %1637 = vmatpush3.bf16.msra.mxu1 %v2126_v10 }
  0xf9   : > { %1638 = vmatprep.subr.bf16.mxu1 %v2272_v2 }
  0xfc   : > { %1639 = vmatpush3.bf16.msra.mxu1 %v2132_v11 }
  0xfd   : > { %1640 = vmatprep.subr.bf16.mxu1 %v2272_v2 }
 0x100   : > { %1641 = vmatpush3.bf16.msra.mxu1 %v2139_v5 }
 0x101   : > { %1642 = vmatprep.subr.bf16.mxu1 %v2272_v2 }
 0x104   : > { %1643 = vmatpush3.bf16.msra.mxu1 %v2146_v14 }
 0x105   : > { %1644 = vmatprep.subr.bf16.mxu1 %v2272_v2 }
 0x108   : > { %1645 = vmatpush3.bf16.msra.mxu1 %v2153_v27 }
 0x109   : > { %1646 = vmatprep.subr.bf16.mxu1 %v2272_v2 }
 0x1ca   : > { %v876_v35 = vpop.f32.mrb[4].mxu1 }
 0x1cb   : > { %v877_v36 = vadd.f32 %v876_v35, %v2161_v33  ;;  %v878_v37 = vpop.f32.mrb[5].mxu1 }
 0x1cc   : > { %v879_v38 = vadd.f32 %v878_v37, %v2163_v34  ;;  %v880_v39 = vpop.f32.mrb[6].mxu1 }
 0x1cd   : > { %v1505_v40 = vmul.f32 -1.442695, %v877_v36  ;;  %v881_v41 = vadd.f32 %v880_v39, %v2161_v33  ;;  %v882_v42 = vpop.f32.mrb[7].mxu1 }
 0x1ce   : > { %v1506_v43 = vmul.f32 -1.442695, %v879_v38  ;;  %v883_v44 = vadd.f32 %v882_v42, %v2163_v34 }
 0x1cf   : > { %1738 = vpow2.f32 %v1505_v40  ;;  %v1507_v45 = vmul.f32 -1.442695, %v881_v41 }
 0x1d0   : > { %1740 = vpow2.f32 %v1506_v43  ;;  %v1508_v46 = vmul.f32 -1.442695, %v883_v44 }
 0x1d1   : > { %1742 = vpow2.f32 %v1507_v45 }
 0x1d2   : > { %1744 = vpow2.f32 %v1508_v46 }
 0x1d9   : > { %v1739_v47 = vpop.eup %1738 }
 0x1da   : > { %v1741_v51 = vpop.eup %1740  ;;  %v897_v53 = vadd.f32 1.0, %v1739_v47  ;;  %v2275_v47 = vmov 0  }
 0x1db   : > { %v1743_v28 = vpop.eup %1742  ;;  %v898_v29 = vadd.f32 1.0, %v1741_v51 }
 0x1dc   : > { %v1745_v30 = vpop.eup %1744  ;;  %1746 = vrcp.f32 %v897_v53  ;;  %v899_v31 = vadd.f32 1.0, %v1743_v28 }
 0x1dd   : > { %1748 = vrcp.f32 %v898_v29  ;;  %v900_v32 = vadd.f32 1.0, %v1745_v30 }
 0x1de   : > { %1750 = vrcp.f32 %v899_v31 }
 0x1df   : > { %1752 = vrcp.f32 %v900_v32 }
 0x1e6   : > { %v1747_v35 = vpop.eup %1746 }
 0x1e7   : > { %v1749_v37 = vpop.eup %1748  ;;  %v909_v42 = vmul.f32 %v1747_v35, %v877_v36 }
 0x1e8   : > { %v1751_v39 = vpop.eup %1750  ;;  %v910_v45 = vmul.f32 %v1749_v37, %v879_v38 }
 0x1e9   : > { %v1753_v40 = vpop.eup %1752  ;;  %v911_v43 = vmul.f32 %v1751_v39, %v881_v41 }
 0x1ea   : > { %v912_v46 = vmul.f32 %v1753_v40, %v883_v44 }
 0x1eb   : > { %v913_v2 = vpack.c.bf16 %v911_v43, %v909_v42 }
 0x1ec   : > { %v914_v26 = vpack.c.bf16 %v912_v46, %v910_v45 }
 0x1ee   : > { %1075 = vmatprep.mubr.bf16.mxu0 %v914_v26 }
 0x1ef   : > { %1076 = vmatmul.mubr.bf16.vlgmr.msra.gmra.mrb[8].mxu0 %v913_v2  ;;  %v1208_v2 = vpack.c.bf16 %v2020_v52, %v2016_v49 }
 0x1f0   : > { %1210 = vmatpush1.bf16.msra.mxu0 %v1904_v7  ;;  %1241 = vmatprep.mubr.bf16.mxu0 %v2275_v47  ;;  %v2276_v7 = vmov 0.0  }
 0x1f1   : > { %1211 = vmatprep.subr.bf16.mxu0 %v1917_v8  ;;  %v1735_v8 = vld [vmem:[%s2269_s13 + $0x28] sm:$0xff]  }
 0x1f2   : > { %1647 = vmatpush3.bf16.msra.mxu1 %v1735_v8 }
 0x1f3   : > { %1648 = vmatprep.subr.bf16.mxu1 %v2276_v7 }
 0x1f4   : > { %1212 = vmatpush1.bf16.msra.mxu0 %v1928_v12  ;;  %v1736_v12 = vld [vmem:[%s2269_s13 + $0x30] sm:$0xff]  }
 0x1f5   : > { %1213 = vmatprep.subr.bf16.mxu0 %v1934_v13  ;;  %v1737_v13 = vld [vmem:[%s2269_s13 + $0x38] sm:$0xff]  }
 0x1f6   : > { %1649 = vmatpush3.bf16.msra.mxu1 %v1736_v12 }
 0x1f7   : > { %1650 = vmatprep.subr.bf16.mxu1 %v2276_v7 }
 0x1f8   : > { %1214 = vmatpush1.bf16.msra.mxu0 %v1943_v15 }
 0x1f9   : > { %1215 = vmatprep.subr.bf16.mxu0 %v1948_v16 }
 0x1fa   : > { %1651 = vmatpush3.bf16.msra.mxu1 %v1737_v13 }
 0x1fb   : > { %1587 = vmatprep.subr.bf16.mxu1 %v2029_v54 }
 0x1fc   : > { %1216 = vmatpush1.bf16.msra.mxu0 %v1956_v17 }
 0x1fd   : > { %1217 = vmatprep.subr.bf16.mxu0 %v1964_v18 }
 0x200   : > { %1218 = vmatpush1.bf16.msra.mxu0 %v1969_v19 }
 0x201   : > { %1219 = vmatprep.subr.bf16.mxu0 %v1981_v21 }
 0x204   : > { %1220 = vmatpush1.bf16.msra.mxu0 %v1976_v20 }
 0x205   : > { %1221 = vmatprep.subr.bf16.mxu0 %v1988_v22  ;;  %v2218_v22 = vld [vmem:[%s2268_s12] ss:$0 sm:$0xff] }
 0x208   : > { %1222 = vmatpush1.bf16.msra.mxu0 %v1993_v23 }
 0x209   : > { %1223 = vmatprep.subr.bf16.mxu0 %v2000_v24 }
 0x20c   : > { %1224 = vmatpush1.bf16.msra.mxu0 %v2005_v25 }
 0x20d   : > { %1656 = vmatprep.subr.bf16.mxu0 %v2276_v7 }
 0x20f   : > { %1242 = vmatmul.mubr.bf16.vlgmr.msra.gmra.mrb[12].mxu0 %v1208_v2  ;;  %v1526_v2 = vld [vmem:[%s2270_s14] ss:$0 sm:$0xff] }
 0x210   : > { %1657 = vmatpush3.bf16.msra.mxu0 %v2126_v10  ;;  %1672 = vmatprep.mubr.msk.bf16.mxu0 %vm1779_vm1, %v2276_v7 }
 0x211   : > { %1658 = vmatprep.subr.bf16.mxu0 %v2276_v7 }
 0x214   : > { %1659 = vmatpush3.bf16.msra.mxu0 %v2132_v11 }
 0x215   : > { %1660 = vmatprep.subr.bf16.mxu0 %v2276_v7 }
 0x218   : > { %1661 = vmatpush3.bf16.msra.mxu0 %v2139_v5 }
 0x219   : > { %1662 = vmatprep.subr.bf16.mxu0 %v2276_v7 }
 0x21c   : > { %1663 = vmatpush3.bf16.msra.mxu0 %v2146_v14 }
 0x21d   : > { %1664 = vmatprep.subr.bf16.mxu0 %v2276_v7 }
 0x220   : > { %1665 = vmatpush3.bf16.msra.mxu0 %v2153_v27 }
 0x221   : > { %1666 = vmatprep.subr.bf16.mxu0 %v2276_v7 }
 0x224   : > { %1667 = vmatpush3.bf16.msra.mxu0 %v1735_v8  ;;  %v1371_v8 = vstv %s1370_s24 }
 0x225   : > { %1668 = vmatprep.subr.bf16.mxu0 %v2276_v7 }
 0x228   : > { %1669 = vmatpush3.bf16.msra.mxu0 %v1736_v12 }
 0x229   : > { %1670 = vmatprep.subr.bf16.mxu0 %v2276_v7 }
 0x22c   : > { %1671 = vmatpush3.bf16.msra.mxu0 %v1737_v13 }
 0x2c2   : > { %v1572_v15 = vpop.f32.mrb[8].mxu0 }
 0x2c3   : > { %v1573_v16 = vpop.f32.mrb[9].mxu0 }
 0x2c4   : > { %v1574_v17 = vadd.f32 %v1573_v16, %v1572_v15  ;;  %v1575_v18 = vpop.f32.mrb[10].mxu0 }
 0x2c5   : > { %v1576_v19 = vpop.f32.mrb[11].mxu0 }
 0x2c6   : > { %v1084_v20 = vadd.f32 %v1574_v17, %v2014_v48  ;;  %v1577_v21 = vadd.f32 %v1576_v19, %v1575_v18 }
 0x2c8   : > { %v1085_v23 = vadd.f32 %v1577_v21, %v2018_v50  ;;  %v1093_v24 = vadd.f32 %v2218_v22, %v1084_v20 }
 0x2ca   : > { %v1094_v25 = vadd.f32 %v2218_v22, %v1085_v23 }
 0x2cc   : > { %v1095_v26 = vpack.c.bf16 %v1094_v25, %v1093_v24 }
 0x2ce   : > { %1653 = vmatmul.mubr.bf16.vlgmr.msra.gmra.mrb[8].mxu1 %v1095_v26 }
 0x2cf   : > { %1588 = vmatpush3.bf16.msra.mxu1 %v2034_v55 }
 0x2d0   : > { %1589 = vmatprep.subr.bf16.mxu1 %v2041_v56 }
 0x2d3   : > { %1590 = vmatpush3.bf16.msra.mxu1 %v2046_v57 }
 0x2d4   : > { %1591 = vmatprep.subr.bf16.mxu1 %v2053_v58 }
 0x2d7   : > { %1592 = vmatpush3.bf16.msra.mxu1 %v2058_v59 }
 0x2d8   : > { %1593 = vmatprep.subr.bf16.mxu1 %v2065_v60 }
 0x2db   : > { %1594 = vmatpush3.bf16.msra.mxu1 %v2070_v61 }
 0x2dc   : > { %1595 = vmatprep.subr.bf16.mxu1 %v2077_v62 }
 0x2df   : > { %1596 = vmatpush3.bf16.msra.mxu1 %v2082_v63 }
 0x2e0   : > { %1597 = vmatprep.subr.bf16.mxu1 %v2089_v0 }
 0x2e2   : > { %v1243_v48 = vpop.f32.mrb[12].mxu0 }
 0x2e3   : > { %v1244_v50 = vadd.f32 %v1243_v48, %v2161_v33  ;;  %v1245_v54 = vpop.f32.mrb[13].mxu0  ;;  %1598 = vmatpush3.bf16.msra.mxu1 %v2094_v1 }
 0x2e4   : > { %v1246_v55 = vadd.f32 %v1245_v54, %v2163_v34  ;;  %v1247_v56 = vpop.f32.mrb[14].mxu0  ;;  %1599 = vmatprep.subr.bf16.mxu1 %v2101_v3 }
 0x2e5   : > { %v1535_v57 = vmul.f32 -1.442695, %v1244_v50  ;;  %v1248_v58 = vadd.f32 %v1247_v56, %v2161_v33  ;;  %v1249_v59 = vpop.f32.mrb[15].mxu0 }
 0x2e6   : > { %v1536_v60 = vmul.f32 -1.442695, %v1246_v55  ;;  %v1250_v61 = vadd.f32 %v1249_v59, %v2163_v34 }
 0x2e7   : > { %1754 = vpow2.f32 %v1535_v57  ;;  %v1537_v62 = vmul.f32 -1.442695, %v1248_v58  ;;  %1600 = vmatpush3.bf16.msra.mxu1 %v2106_v4 }
 0x2e8   : > { %1756 = vpow2.f32 %v1536_v60  ;;  %v1538_v63 = vmul.f32 -1.442695, %v1250_v61  ;;  %1601 = vmatprep.subr.bf16.mxu1 %v2113_v6 }
 0x2e9   : > { %1758 = vpow2.f32 %v1537_v62 }
 0x2ea   : > { %1760 = vpow2.f32 %v1538_v63 }
 0x2eb   : > { %1602 = vmatpush3.bf16.msra.mxu1 %v2118_v9 }
 0x2f1   : > { %v1755_v0 = vpop.eup %1754 }
 0x2f2   : > { %v1757_v1 = vpop.eup %1756  ;;  %v1264_v3 = vadd.f32 1.0, %v1755_v0 }
 0x2f3   : > { %v1759_v10 = vpop.eup %1758  ;;  %v1265_v11 = vadd.f32 1.0, %v1757_v1 }
 0x2f4   : > { %v1761_v5 = vpop.eup %1760  ;;  %1762 = vrcp.f32 %v1264_v3  ;;  %v1266_v14 = vadd.f32 1.0, %v1759_v10 }
 0x2f5   : > { %1764 = vrcp.f32 %v1265_v11  ;;  %v1267_v27 = vadd.f32 1.0, %v1761_v5 }
 0x2f6   : > { %1766 = vrcp.f32 %v1266_v14 }
 0x2f7   : > { %1768 = vrcp.f32 %v1267_v27 }
 0x2fe   : > { %v1763_v4 = vpop.eup %1762 }
 0x2ff   : > { %v1765_v33 = vpop.eup %1764  ;;  %v1276_v36 = vmul.f32 %v1763_v4, %v1244_v50 }
 0x300   : > { %v1767_v34 = vpop.eup %1766  ;;  %v1277_v41 = vmul.f32 %v1765_v33, %v1246_v55 }
 0x301   : > { %v1769_v6 = vpop.eup %1768  ;;  %v1278_v38 = vmul.f32 %v1767_v34, %v1248_v58 }
 0x302   : > { %v1279_v9 = vmul.f32 %v1769_v6, %v1250_v61 }
 0x303   : > { %v1280_v44 = vpack.c.bf16 %v1278_v38, %v1276_v36 }
 0x304   : > { %v1281_v51 = vpack.c.bf16 %v1279_v9, %v1277_v41 }
 0x306   : > { %1314 = vmatprep.mubr.bf16.mxu1 %v1281_v51 }
 0x307   : > { %1315 = vmatmul.mubr.bf16.vlgmr.msra.gmra.mrb[12].mxu1 %v1280_v44 }
 0x3a1   : > { %v1201_v53 = vpop.f32.mrb[8].mxu1 }
 0x3a2   : > { %v1654_v28 = vpop.f32.mrb[9].mxu1  ;;  %v1202_v7 = vadd.f32 %v1526_v2, %v1201_v53 }
 0x3a3   : > { %v1204_v29 = vpop.f32.mrb[10].mxu1 }
 0x3a4   : > { %v1655_v30 = vpop.f32.mrb[11].mxu1  ;;  %v1205_v13 = vadd.f32 %v1526_v2, %v1204_v29  ;;  %v1372_v17 = vmul.f32 %v1371_v8, %v1202_v7 }
 0x3a6   : > { %v1373_v21 = vmul.f32 %v1371_v8, %v1205_v13 }
 0x3da   : > { %v1603_v31 = vpop.f32.mrb[12].mxu1 }
 0x3db   : > { %v1604_v32 = vpop.f32.mrb[13].mxu1 }
 0x3dc   : > { %v1605_v35 = vadd.f32 %v1604_v32, %v1603_v31  ;;  %v1606_v37 = vpop.f32.mrb[14].mxu1 }
 0x3dd   : > { %v1607_v39 = vpop.f32.mrb[15].mxu1 }
 0x3de   : > { %v1323_v40 = vadd.f32 %v1605_v35, %v2016_v49  ;;  %v1608_v42 = vadd.f32 %v1607_v39, %v1606_v37  ;;  %v1374_v49 = vstv %s1369_s21 }
 0x3e0   : > { %v1324_v43 = vadd.f32 %v1608_v42, %v2020_v52  ;;  %v1325_v45 = vadd.f32 %v2218_v22, %v1323_v40 }
 0x3e2   : > { %v1326_v46 = vadd.f32 %v2218_v22, %v1324_v43 }
 0x3e4   : > { %v1327_v47 = vpack.c.bf16 %v1326_v46, %v1325_v45 }
 0x3e6   : > { %1673 = vmatmul.mubr.bf16.vlgmr.msra.gmra.mrb[16].mxu0 %v1327_v47 }
 0x4b9   : > { %v1362_v12 = vpop.f32.mrb[16].mxu0 }
 0x4ba   : > { %v1363_v15 = vadd.f32 %v1526_v2, %v1362_v12  ;;  %v1674_v52 = vpop.f32.mrb[17].mxu0 }
 0x4bb   : > { %v1365_v16 = vpop.f32.mrb[18].mxu0 }
 0x4bc   : > { %v1375_v18 = vmul.f32 %v1374_v49, %v1363_v15  ;;  %v1366_v19 = vadd.f32 %v1526_v2, %v1365_v16  ;;  %v1675_v20 = vpop.f32.mrb[19].mxu0 }
 0x4be   : > { %v1377_v22 = vsub.f32 %v1372_v17, %v1375_v18  ;;  %v1376_v23 = vmul.f32 %v1374_v49, %v1366_v19 }
 0x4c0   : > { %v1378_v24 = vsub.f32 %v1373_v21, %v1376_v23 }
 0x4c2   : > { %v1548_v25 = vpack.c.bf16 %v1378_v24, %v1377_v22 }
 0x4c4   : > { %1549 = vst [vmem:[%s542_s26] sm:$0xff] %v1548_v25  }
 0x4c5 PF: > { %s27_s22 = sadd.s32 1, %s1776_s22  }
 0x4c6   : > { %p24_p4 = scmp.ge.s32.totalorder %s27_s22, 4  }
 0x4c8   :  { %26 = sbr.rel (!%p24_p4) target bundleno = 3 (0x3), region = 116 }

</bundles_post_ra>
